<compile_context>
chip_gen: v7x
topology: tpu7x:2x2x1
jax: 0.10.0
libtpu: 0.0.40
codegen_flags: <defaults>
</compile_context>

<pallas_src>
import numpy as np
import jax
import jax.numpy as jnp
from jax.experimental import pallas as pl
from jax.experimental.pallas import tpu as pltpu


# ----------------------------------------------------------------------------
# Pallas kernel: one sample per grid step
# ----------------------------------------------------------------------------
def _make_up_kernel(H, W):
    L = H * W
    taps = [(dy, dx) for dy in (-1, 0, 1) for dx in (-1, 0, 1)]

    def conv3x3(x, mask, w_ref, b_ref):
        # x:    (C, L) f32 activation, lane index = i*W + j
        # mask: (9, L) f32 validity masks per tap
        # w_ref:(9, Co, C) bf16 per-tap weights (BN scale pre-folded)
        # b_ref:(Co, 1) f32 folded BN bias
        # Accumulate 9 shifted dots (no materialized im2col, no concat).
        acc = jnp.dot(w_ref[4], x.astype(jnp.bfloat16),       # centre tap: no roll/mask
                      preferred_element_type=jnp.float32)
        for t, (dy, dx) in enumerate(taps):
            if dy == 0 and dx == 0:
                continue
            shift = (-(dy * W + dx)) % L                       # static lane rotate (XLU)
            xt = pltpu.roll(x, shift, 1) * mask[t:t + 1, :]
            acc = acc + jnp.dot(w_ref[t], xt.astype(jnp.bfloat16),
                                preferred_element_type=jnp.float32)
        return jnp.maximum(acc + b_ref[...], 0.0)

    def kernel(x2_ref, x1_ref, ub_ref, mask_ref, w1_ref, b1_ref,
               w2_ref, b2_ref, o_ref):
        mask = mask_ref[...]                                   # (9, L) f32

        # Bilinear x2 upsample (align_corners=True) + F.pad: one bf16 matmul.
        up = jnp.dot(x1_ref[0], ub_ref[...],
                     preferred_element_type=jnp.float32)       # (C1, L) f32
        xin = jnp.concatenate([x2_ref[0], up], axis=0)         # (Cin, L) f32

        # conv1 (+folded BN1) + ReLU
        y1 = conv3x3(xin, mask, w1_ref, b1_ref)                # (Cmid_p, L)
        # TODO(synk): Dropout2d(0.1) is identity in eval mode; train-mode dropout
        # is not implemented.

        # conv2 (+folded BN2) + ReLU
        y2 = conv3x3(y1, mask, w2_ref, b2_ref)                 # (Cout_p, L)

        o_ref[0] = y2.astype(o_ref.dtype)

    return kernel


# ----------------------------------------------------------------------------
# Host-side constants (built once)
# ----------------------------------------------------------------------------
def _bilinear_up_pad_matrix(in_size, out_size):
    """(out_size, in_size) M with M @ v == F.pad(Upsample(x2, bilinear,
    align_corners=True)(v)) along one spatial axis (pad_before = diff // 2)."""
    up = 2 * in_size
    pad_before = (out_size - up) // 2
    if in_size == 1:
        M = np.ones((up, 1), np.float32)
    else:
        src = np.arange(up, dtype=np.float64) * (in_size - 1) / (up - 1)
        i0 = np.clip(np.floor(src).astype(np.int64), 0, in_size - 1)
        i1 = np.minimum(i0 + 1, in_size - 1)
        frac = (src - i0).astype(np.float32)
        M = np.zeros((up, in_size), np.float32)
        M[np.arange(up), i0] += (1.0 - frac)
        M[np.arange(up), i1] += frac
    out = np.zeros((out_size, in_size), np.float32)
    out[pad_before:pad_before + up] = M
    return out


def _tap_masks(H, W):
    """(9, H*W) 0/1 masks: tap (dy, dx) valid where (i+dy, j+dx) is in-bounds.
    These also kill the modular wrap-around of the per-sample lane rolls."""
    ii = np.arange(H)[:, None]
    jj = np.arange(W)[None, :]
    rows = []
    for dy in (-1, 0, 1):
        for dx in (-1, 0, 1):
            m = ((ii + dy >= 0) & (ii + dy < H) &
                 (jj + dx >= 0) & (jj + dx < W)).astype(np.float32)
            rows.append(m.reshape(-1))
    return np.stack(rows, axis=0)


def fold_bn(gamma, beta, mean, var, eps=1e-5):
    s = gamma / jnp.sqrt(var + eps)
    b = beta - mean * s
    return s, b


def _round_up(x, m):
    return ((x + m - 1) // m) * m


# ----------------------------------------------------------------------------
# Builder: precompute constants, return a jitted forward
# ----------------------------------------------------------------------------
def build_up(params, *, H1, W1, H, W):
    Cmid, Cin = params['w1'].shape[:2]
    Cout = params['w2'].shape[0]
    L, Q = H * W, H1 * W1
    Cmid_p = _round_up(Cmid, 8)
    Cout_p = _round_up(Cout, 8)

    # Upsample+pad matrix for ONE sample (no kron(I_N) zero inflation).
    # TODO(synk): for production shapes use the separable (H,H1)/(W,W1) two-matmul
    # form and a spatial grid axis (lane tile a multiple of 256, "parallel").
    U = np.kron(_bilinear_up_pad_matrix(H1, H), _bilinear_up_pad_matrix(W1, W))  # (L, Q)
    ub = jnp.asarray(U.T).astype(jnp.bfloat16)                                   # (Q, L)
    mask = jnp.asarray(_tap_masks(H, W))                                         # (9, L) f32

    # Fold BN (eval) into the conv weights; per-tap layout (9, Co_pad, Ci_pad).
    s1, b1 = fold_bn(params['g1'], params['be1'], params['m1'], params['v1'])
    s2, b2 = fold_bn(params['g2'], params['be2'], params['m2'], params['v2'])
    w1t = jnp.transpose(params['w1'] * s1[:, None, None, None], (2, 3, 0, 1)).reshape(9, Cmid, Cin)
    w2t = jnp.transpose(params['w2'] * s2[:, None, None, None], (2, 3, 0, 1)).reshape(9, Cout, Cmid)
    w1t = jnp.pad(w1t, ((0, 0), (0, Cmid_p - Cmid), (0, 0))).astype(jnp.bfloat16)
    w2t = jnp.pad(w2t, ((0, 0), (0, Cout_p - Cout), (0, Cmid_p - Cmid))).astype(jnp.bfloat16)
    b1p = jnp.pad(b1, (0, Cmid_p - Cmid)).reshape(Cmid_p, 1).astype(jnp.float32)
    b2p = jnp.pad(b2, (0, Cout_p - Cout)).reshape(Cout_p, 1).astype(jnp.float32)

    kernel = _make_up_kernel(H, W)
    vmem = pl.BlockSpec(memory_space=pltpu.MemorySpace.VMEM)

    @jax.jit
    def forward(x1, x2):
        N, C1 = x1.shape[0], x1.shape[1]
        C2 = x2.shape[1]
        assert C1 + C2 == Cin
        # Lane-dense per-sample layout: (N, C, H*W), lane index = i*W + j.
        x2f = x2.reshape(N, C2, L)
        x1f = x1.reshape(N, C1, Q).astype(jnp.bfloat16)

        out = pl.pallas_call(
            kernel,
            out_shape=jax.ShapeDtypeStruct((N, Cout_p, L), jnp.float32),
            grid=(N,),
            in_specs=[
                pl.BlockSpec((1, C2, L), lambda n: (n, 0, 0)),
                pl.BlockSpec((1, C1, Q), lambda n: (n, 0, 0)),
                vmem, vmem, vmem, vmem, vmem, vmem,
            ],
            out_specs=pl.BlockSpec((1, Cout_p, L), lambda n: (n, 0, 0)),
            compiler_params=pltpu.CompilerParams(
                dimension_semantics=("parallel",)),   # shard samples across TCs on v7x
        )(x2f, x1f, ub, mask, w1t, b1p, w2t, b2p)

        return out[:, :Cout, :].reshape(N, Cout, H, W)

    return forward


# ----------------------------------------------------------------------------
# Pure-JAX f32 reference (same math) for the correctness check
# ----------------------------------------------------------------------------
def up_forward_ref(x1, x2, params):
    _, _, H1, W1 = x1.shape
    _, _, H, W = x2.shape
    uh = jnp.asarray(_bilinear_up_pad_matrix(H1, H))
    uw = jnp.asarray(_bilinear_up_pad_matrix(W1, W))
    up = jnp.einsum('hk,nckw->nchw', uh, x1, precision='highest')
    up = jnp.einsum('nchk,wk->nchw', up, uw, precision='highest')
    x = jnp.concatenate([x2, up], axis=1)
    s1, b1 = fold_bn(params['g1'], params['be1'], params['m1'], params['v1'])
    s2, b2 = fold_bn(params['g2'], params['be2'], params['m2'], params['v2'])

    def conv3x3(x, w):
        return jax.lax.conv_general_dilated(
            x, w, (1, 1), ((1, 1), (1, 1)),
            dimension_numbers=('NCHW', 'OIHW', 'NCHW'), precision='highest')

    y = jnp.maximum(conv3x3(x, params['w1']) * s1[:, None, None] + b1[:, None, None], 0.0)
    y = jnp.maximum(conv3x3(y, params['w2']) * s2[:, None, None] + b2[:, None, None], 0.0)
    return y


if __name__ == "__main__":
    # Up(in_channels=8, out_channels=4, bilinear=True) => mid_channels = 4
    in_channels, out_channels = 8, 4
    mid_channels = in_channels // 2
    N = 2
    C1 = in_channels // 2            # channels of x1 (from below)
    C2 = in_channels - C1            # channels of x2 (skip connection)
    H1, W1 = 7, 7                    # x1 spatial (upsampled to 14, padded to 16)
    H, W = 16, 16                    # x2 spatial

    key = jax.random.PRNGKey(0)
    ks = jax.random.split(key, 12)
    x1 = jax.random.normal(ks[0], (N, C1, H1, W1), jnp.float32)
    x2 = jax.random.normal(ks[1], (N, C2, H, W), jnp.float32)

    params = dict(
        w1=jax.random.normal(ks[2], (mid_channels, in_channels, 3, 3), jnp.float32) * 0.1,
        g1=1.0 + 0.1 * jax.random.normal(ks[3], (mid_channels,), jnp.float32),
        be1=0.1 * jax.random.normal(ks[4], (mid_channels,), jnp.float32),
        m1=0.1 * jax.random.normal(ks[5], (mid_channels,), jnp.float32),
        v1=jax.random.uniform(ks[6], (mid_channels,), jnp.float32, 0.5, 1.5),
        w2=jax.random.normal(ks[7], (out_channels, mid_channels, 3, 3), jnp.float32) * 0.1,
        g2=1.0 + 0.1 * jax.random.normal(ks[8], (out_channels,), jnp.float32),
        be2=0.1 * jax.random.normal(ks[9], (out_channels,), jnp.float32),
        m2=0.1 * jax.random.normal(ks[10], (out_channels,), jnp.float32),
        v2=jax.random.uniform(ks[11], (out_channels,), jnp.float32, 0.5, 1.5),
    )

    forward = build_up(params, H1=H1, W1=W1, H=H, W=W)   # constants built once
    out = jax.block_until_ready(forward(x1, x2))
    ref = jax.block_until_ready(up_forward_ref(x1, x2, params))

    assert out.shape == (N, out_channels, H, W)
    # Tolerance is looser than 1e-3 because the kernel uses bf16 MXU operands
    # (f32 accumulation), per the perf review; the reference is full f32.
    np.testing.assert_allclose(np.asarray(out), np.asarray(ref), rtol=3e-2, atol=3e-2)

    print("KERNEL_OK")
</pallas_src>

<mosaic_0001>
module attributes {stable_mosaic.version = 11 : i64} {
  func.func @kernel(%arg0: i32, %arg1: memref<1x4x256xf32, #tpu.memory_space<vmem>>, %arg2: memref<1x4x49xbf16, #tpu.memory_space<vmem>>, %arg3: memref<49x256xbf16, #tpu.memory_space<vmem>>, %arg4: memref<9x256xf32, #tpu.memory_space<vmem>>, %arg5: memref<9x8x8xbf16, #tpu.memory_space<vmem>>, %arg6: memref<8x1xf32, #tpu.memory_space<vmem>>, %arg7: memref<9x8x8xbf16, #tpu.memory_space<vmem>>, %arg8: memref<8x1xf32, #tpu.memory_space<vmem>>, %arg9: memref<1x8x256xf32, #tpu.memory_space<vmem>>) attributes {dimension_semantics = [#tpu.dimension_semantics<parallel>], iteration_bounds = array<i64: 2>, scalar_prefetch = 0 : i64, scratch_operands = 0 : i64, tpu.core_type = #tpu.core_type<tc>, window_params = [{transform_indices = @transform_0, window_bounds = array<i64: 1, 4, 256>}, {transform_indices = @transform_1, window_bounds = array<i64: 1, 4, 49>}, {pipeline_mode = #tpu.pipeline_mode<synchronous>, transform_indices = @transform_2, window_bounds = array<i64: 49, 256>}, {pipeline_mode = #tpu.pipeline_mode<synchronous>, transform_indices = @transform_3, window_bounds = array<i64: 9, 256>}, {pipeline_mode = #tpu.pipeline_mode<synchronous>, transform_indices = @transform_4, window_bounds = array<i64: 9, 8, 8>}, {pipeline_mode = #tpu.pipeline_mode<synchronous>, transform_indices = @transform_5, window_bounds = array<i64: 8, 1>}, {pipeline_mode = #tpu.pipeline_mode<synchronous>, transform_indices = @transform_6, window_bounds = array<i64: 9, 8, 8>}, {pipeline_mode = #tpu.pipeline_mode<synchronous>, transform_indices = @transform_7, window_bounds = array<i64: 8, 1>}, {transform_indices = @transform_8, window_bounds = array<i64: 1, 8, 256>}]} {
    %c0 = arith.constant 0 : index
    %c0_0 = arith.constant 0 : index
    %0 = vector.load %arg4[%c0, %c0_0] : memref<9x256xf32, #tpu.memory_space<vmem>>, vector<9x256xf32>
    %c0_1 = arith.constant 0 : index
    %c0_2 = arith.constant 0 : index
    %c0_3 = arith.constant 0 : index
    %1 = vector.load %arg2[%c0_1, %c0_2, %c0_3] : memref<1x4x49xbf16, #tpu.memory_space<vmem>>, vector<1x4x49xbf16>
    %2 = vector.shape_cast %1 : vector<1x4x49xbf16> to vector<4x49xbf16>
    %c0_4 = arith.constant 0 : index
    %c0_5 = arith.constant 0 : index
    %3 = vector.load %arg3[%c0_4, %c0_5] : memref<49x256xbf16, #tpu.memory_space<vmem>>, vector<49x256xbf16>
    %cst = arith.constant dense<0.000000e+00> : vector<4x256xf32>
    %4 = tpu.matmul %2, %3, %cst {dimension_numbers = #tpu.dot_dimension_numbers<[1], [0], [0], [1], [0, 0, 1, 1], [], []>} : vector<4x49xbf16>, vector<49x256xbf16>, vector<4x256xf32> -> vector<4x256xf32>
    %c0_6 = arith.constant 0 : index
    %c0_7 = arith.constant 0 : index
    %c0_8 = arith.constant 0 : index
    %5 = vector.load %arg1[%c0_6, %c0_7, %c0_8] : memref<1x4x256xf32, #tpu.memory_space<vmem>>, vector<1x4x256xf32>
    %6 = vector.shape_cast %5 : vector<1x4x256xf32> to vector<4x256xf32>
    %7 = tpu.concatenate %6, %4 in 0 : vector<4x256xf32>, vector<4x256xf32> -> vector<8x256xf32>
    %c4 = arith.constant 4 : index
    %c0_9 = arith.constant 0 : index
    %c0_10 = arith.constant 0 : index
    %8 = vector.load %arg5[%c4, %c0_9, %c0_10] : memref<9x8x8xbf16, #tpu.memory_space<vmem>>, vector<1x8x8xbf16>
    %9 = vector.shape_cast %8 : vector<1x8x8xbf16> to vector<8x8xbf16>
    %10 = arith.truncf %7 : vector<8x256xf32> to vector<8x256xbf16>
    %cst_11 = arith.constant dense<0.000000e+00> : vector<8x256xf32>
    %11 = tpu.matmul %9, %10, %cst_11 {dimension_numbers = #tpu.dot_dimension_numbers<[1], [0], [0], [1], [0, 0, 1, 1], [], []>} : vector<8x8xbf16>, vector<8x256xbf16>, vector<8x256xf32> -> vector<8x256xf32>
    %c17_i32 = arith.constant 17 : i32
    %12 = tpu.dynamic_rotate %7 by %c17_i32 dim 1 : vector<8x256xf32>, i32 -> vector<8x256xf32>
    %13 = vector.extract_strided_slice %0 {offsets = [0, 0], sizes = [1, 256], strides = [1, 1]} : vector<9x256xf32> to vector<1x256xf32>
    %14 = vector.broadcast %13 : vector<1x256xf32> to vector<8x256xf32>
    %15 = arith.mulf %12, %14 : vector<8x256xf32>
    %c0_12 = arith.constant 0 : index
    %c0_13 = arith.constant 0 : index
    %c0_14 = arith.constant 0 : index
    %16 = vector.load %arg5[%c0_12, %c0_13, %c0_14] : memref<9x8x8xbf16, #tpu.memory_space<vmem>>, vector<1x8x8xbf16>
    %17 = vector.shape_cast %16 : vector<1x8x8xbf16> to vector<8x8xbf16>
    %18 = arith.truncf %15 : vector<8x256xf32> to vector<8x256xbf16>
    %cst_15 = arith.constant dense<0.000000e+00> : vector<8x256xf32>
    %19 = tpu.matmul %17, %18, %cst_15 {dimension_numbers = #tpu.dot_dimension_numbers<[1], [0], [0], [1], [0, 0, 1, 1], [], []>} : vector<8x8xbf16>, vector<8x256xbf16>, vector<8x256xf32> -> vector<8x256xf32>
    %20 = arith.addf %11, %19 : vector<8x256xf32>
    %c16_i32 = arith.constant 16 : i32
    %21 = tpu.dynamic_rotate %7 by %c16_i32 dim 1 : vector<8x256xf32>, i32 -> vector<8x256xf32>
    %22 = vector.extract_strided_slice %0 {offsets = [1, 0], sizes = [1, 256], strides = [1, 1]} : vector<9x256xf32> to vector<1x256xf32>
    %23 = vector.broadcast %22 : vector<1x256xf32> to vector<8x256xf32>
    %24 = arith.mulf %21, %23 : vector<8x256xf32>
    %c1 = arith.constant 1 : index
    %c0_16 = arith.constant 0 : index
    %c0_17 = arith.constant 0 : index
    %25 = vector.load %arg5[%c1, %c0_16, %c0_17] : memref<9x8x8xbf16, #tpu.memory_space<vmem>>, vector<1x8x8xbf16>
    %26 = vector.shape_cast %25 : vector<1x8x8xbf16> to vector<8x8xbf16>
    %27 = arith.truncf %24 : vector<8x256xf32> to vector<8x256xbf16>
    %cst_18 = arith.constant dense<0.000000e+00> : vector<8x256xf32>
    %28 = tpu.matmul %26, %27, %cst_18 {dimension_numbers = #tpu.dot_dimension_numbers<[1], [0], [0], [1], [0, 0, 1, 1], [], []>} : vector<8x8xbf16>, vector<8x256xbf16>, vector<8x256xf32> -> vector<8x256xf32>
    %29 = arith.addf %20, %28 : vector<8x256xf32>
    %c15_i32 = arith.constant 15 : i32
    %30 = tpu.dynamic_rotate %7 by %c15_i32 dim 1 : vector<8x256xf32>, i32 -> vector<8x256xf32>
    %31 = vector.extract_strided_slice %0 {offsets = [2, 0], sizes = [1, 256], strides = [1, 1]} : vector<9x256xf32> to vector<1x256xf32>
    %32 = vector.broadcast %31 : vector<1x256xf32> to vector<8x256xf32>
    %33 = arith.mulf %30, %32 : vector<8x256xf32>
    %c2 = arith.constant 2 : index
    %c0_19 = arith.constant 0 : index
    %c0_20 = arith.constant 0 : index
    %34 = vector.load %arg5[%c2, %c0_19, %c0_20] : memref<9x8x8xbf16, #tpu.memory_space<vmem>>, vector<1x8x8xbf16>
    %35 = vector.shape_cast %34 : vector<1x8x8xbf16> to vector<8x8xbf16>
    %36 = arith.truncf %33 : vector<8x256xf32> to vector<8x256xbf16>
    %cst_21 = arith.constant dense<0.000000e+00> : vector<8x256xf32>
    %37 = tpu.matmul %35, %36, %cst_21 {dimension_numbers = #tpu.dot_dimension_numbers<[1], [0], [0], [1], [0, 0, 1, 1], [], []>} : vector<8x8xbf16>, vector<8x256xbf16>, vector<8x256xf32> -> vector<8x256xf32>
    %38 = arith.addf %29, %37 : vector<8x256xf32>
    %c1_i32 = arith.constant 1 : i32
    %39 = tpu.dynamic_rotate %7 by %c1_i32 dim 1 : vector<8x256xf32>, i32 -> vector<8x256xf32>
    %40 = vector.extract_strided_slice %0 {offsets = [3, 0], sizes = [1, 256], strides = [1, 1]} : vector<9x256xf32> to vector<1x256xf32>
    %41 = vector.broadcast %40 : vector<1x256xf32> to vector<8x256xf32>
    %42 = arith.mulf %39, %41 : vector<8x256xf32>
    %c3 = arith.constant 3 : index
    %c0_22 = arith.constant 0 : index
    %c0_23 = arith.constant 0 : index
    %43 = vector.load %arg5[%c3, %c0_22, %c0_23] : memref<9x8x8xbf16, #tpu.memory_space<vmem>>, vector<1x8x8xbf16>
    %44 = vector.shape_cast %43 : vector<1x8x8xbf16> to vector<8x8xbf16>
    %45 = arith.truncf %42 : vector<8x256xf32> to vector<8x256xbf16>
    %cst_24 = arith.constant dense<0.000000e+00> : vector<8x256xf32>
    %46 = tpu.matmul %44, %45, %cst_24 {dimension_numbers = #tpu.dot_dimension_numbers<[1], [0], [0], [1], [0, 0, 1, 1], [], []>} : vector<8x8xbf16>, vector<8x256xbf16>, vector<8x256xf32> -> vector<8x256xf32>
    %47 = arith.addf %38, %46 : vector<8x256xf32>
    %c255_i32 = arith.constant 255 : i32
    %48 = tpu.dynamic_rotate %7 by %c255_i32 dim 1 : vector<8x256xf32>, i32 -> vector<8x256xf32>
    %49 = vector.extract_strided_slice %0 {offsets = [5, 0], sizes = [1, 256], strides = [1, 1]} : vector<9x256xf32> to vector<1x256xf32>
    %50 = vector.broadcast %49 : vector<1x256xf32> to vector<8x256xf32>
    %51 = arith.mulf %48, %50 : vector<8x256xf32>
    %c5 = arith.constant 5 : index
    %c0_25 = arith.constant 0 : index
    %c0_26 = arith.constant 0 : index
    %52 = vector.load %arg5[%c5, %c0_25, %c0_26] : memref<9x8x8xbf16, #tpu.memory_space<vmem>>, vector<1x8x8xbf16>
    %53 = vector.shape_cast %52 : vector<1x8x8xbf16> to vector<8x8xbf16>
    %54 = arith.truncf %51 : vector<8x256xf32> to vector<8x256xbf16>
    %cst_27 = arith.constant dense<0.000000e+00> : vector<8x256xf32>
    %55 = tpu.matmul %53, %54, %cst_27 {dimension_numbers = #tpu.dot_dimension_numbers<[1], [0], [0], [1], [0, 0, 1, 1], [], []>} : vector<8x8xbf16>, vector<8x256xbf16>, vector<8x256xf32> -> vector<8x256xf32>
    %56 = arith.addf %47, %55 : vector<8x256xf32>
    %c241_i32 = arith.constant 241 : i32
    %57 = tpu.dynamic_rotate %7 by %c241_i32 dim 1 : vector<8x256xf32>, i32 -> vector<8x256xf32>
    %58 = vector.extract_strided_slice %0 {offsets = [6, 0], sizes = [1, 256], strides = [1, 1]} : vector<9x256xf32> to vector<1x256xf32>
    %59 = vector.broadcast %58 : vector<1x256xf32> to vector<8x256xf32>
    %60 = arith.mulf %57, %59 : vector<8x256xf32>
    %c6 = arith.constant 6 : index
    %c0_28 = arith.constant 0 : index
    %c0_29 = arith.constant 0 : index
    %61 = vector.load %arg5[%c6, %c0_28, %c0_29] : memref<9x8x8xbf16, #tpu.memory_space<vmem>>, vector<1x8x8xbf16>
    %62 = vector.shape_cast %61 : vector<1x8x8xbf16> to vector<8x8xbf16>
    %63 = arith.truncf %60 : vector<8x256xf32> to vector<8x256xbf16>
    %cst_30 = arith.constant dense<0.000000e+00> : vector<8x256xf32>
    %64 = tpu.matmul %62, %63, %cst_30 {dimension_numbers = #tpu.dot_dimension_numbers<[1], [0], [0], [1], [0, 0, 1, 1], [], []>} : vector<8x8xbf16>, vector<8x256xbf16>, vector<8x256xf32> -> vector<8x256xf32>
    %65 = arith.addf %56, %64 : vector<8x256xf32>
    %c240_i32 = arith.constant 240 : i32
    %66 = tpu.dynamic_rotate %7 by %c240_i32 dim 1 : vector<8x256xf32>, i32 -> vector<8x256xf32>
    %67 = vector.extract_strided_slice %0 {offsets = [7, 0], sizes = [1, 256], strides = [1, 1]} : vector<9x256xf32> to vector<1x256xf32>
    %68 = vector.broadcast %67 : vector<1x256xf32> to vector<8x256xf32>
    %69 = arith.mulf %66, %68 : vector<8x256xf32>
    %c7 = arith.constant 7 : index
    %c0_31 = arith.constant 0 : index
    %c0_32 = arith.constant 0 : index
    %70 = vector.load %arg5[%c7, %c0_31, %c0_32] : memref<9x8x8xbf16, #tpu.memory_space<vmem>>, vector<1x8x8xbf16>
    %71 = vector.shape_cast %70 : vector<1x8x8xbf16> to vector<8x8xbf16>
    %72 = arith.truncf %69 : vector<8x256xf32> to vector<8x256xbf16>
    %cst_33 = arith.constant dense<0.000000e+00> : vector<8x256xf32>
    %73 = tpu.matmul %71, %72, %cst_33 {dimension_numbers = #tpu.dot_dimension_numbers<[1], [0], [0], [1], [0, 0, 1, 1], [], []>} : vector<8x8xbf16>, vector<8x256xbf16>, vector<8x256xf32> -> vector<8x256xf32>
    %74 = arith.addf %65, %73 : vector<8x256xf32>
    %c239_i32 = arith.constant 239 : i32
    %75 = tpu.dynamic_rotate %7 by %c239_i32 dim 1 : vector<8x256xf32>, i32 -> vector<8x256xf32>
    %76 = vector.extract_strided_slice %0 {offsets = [8, 0], sizes = [1, 256], strides = [1, 1]} : vector<9x256xf32> to vector<1x256xf32>
    %77 = vector.broadcast %76 : vector<1x256xf32> to vector<8x256xf32>
    %78 = arith.mulf %75, %77 : vector<8x256xf32>
    %c8 = arith.constant 8 : index
    %c0_34 = arith.constant 0 : index
    %c0_35 = arith.constant 0 : index
    %79 = vector.load %arg5[%c8, %c0_34, %c0_35] : memref<9x8x8xbf16, #tpu.memory_space<vmem>>, vector<1x8x8xbf16>
    %80 = vector.shape_cast %79 : vector<1x8x8xbf16> to vector<8x8xbf16>
    %81 = arith.truncf %78 : vector<8x256xf32> to vector<8x256xbf16>
    %cst_36 = arith.constant dense<0.000000e+00> : vector<8x256xf32>
    %82 = tpu.matmul %80, %81, %cst_36 {dimension_numbers = #tpu.dot_dimension_numbers<[1], [0], [0], [1], [0, 0, 1, 1], [], []>} : vector<8x8xbf16>, vector<8x256xbf16>, vector<8x256xf32> -> vector<8x256xf32>
    %83 = arith.addf %74, %82 : vector<8x256xf32>
    %c0_37 = arith.constant 0 : index
    %c0_38 = arith.constant 0 : index
    %84 = vector.load %arg6[%c0_37, %c0_38] : memref<8x1xf32, #tpu.memory_space<vmem>>, vector<8x1xf32>
    %85 = vector.broadcast %84 : vector<8x1xf32> to vector<8x256xf32>
    %86 = arith.addf %83, %85 : vector<8x256xf32>
    %cst_39 = arith.constant 0.000000e+00 : f32
    %87 = vector.broadcast %cst_39 : f32 to vector<8x256xf32>
    %88 = arith.maximumf %86, %87 : vector<8x256xf32>
    %c4_40 = arith.constant 4 : index
    %c0_41 = arith.constant 0 : index
    %c0_42 = arith.constant 0 : index
    %89 = vector.load %arg7[%c4_40, %c0_41, %c0_42] : memref<9x8x8xbf16, #tpu.memory_space<vmem>>, vector<1x8x8xbf16>
    %90 = vector.shape_cast %89 : vector<1x8x8xbf16> to vector<8x8xbf16>
    %91 = arith.truncf %88 : vector<8x256xf32> to vector<8x256xbf16>
    %cst_43 = arith.constant dense<0.000000e+00> : vector<8x256xf32>
    %92 = tpu.matmul %90, %91, %cst_43 {dimension_numbers = #tpu.dot_dimension_numbers<[1], [0], [0], [1], [0, 0, 1, 1], [], []>} : vector<8x8xbf16>, vector<8x256xbf16>, vector<8x256xf32> -> vector<8x256xf32>
    %c17_i32_44 = arith.constant 17 : i32
    %93 = tpu.dynamic_rotate %88 by %c17_i32_44 dim 1 : vector<8x256xf32>, i32 -> vector<8x256xf32>
    %94 = vector.extract_strided_slice %0 {offsets = [0, 0], sizes = [1, 256], strides = [1, 1]} : vector<9x256xf32> to vector<1x256xf32>
    %95 = vector.broadcast %94 : vector<1x256xf32> to vector<8x256xf32>
    %96 = arith.mulf %93, %95 : vector<8x256xf32>
    %c0_45 = arith.constant 0 : index
    %c0_46 = arith.constant 0 : index
    %c0_47 = arith.constant 0 : index
    %97 = vector.load %arg7[%c0_45, %c0_46, %c0_47] : memref<9x8x8xbf16, #tpu.memory_space<vmem>>, vector<1x8x8xbf16>
    %98 = vector.shape_cast %97 : vector<1x8x8xbf16> to vector<8x8xbf16>
    %99 = arith.truncf %96 : vector<8x256xf32> to vector<8x256xbf16>
    %cst_48 = arith.constant dense<0.000000e+00> : vector<8x256xf32>
    %100 = tpu.matmul %98, %99, %cst_48 {dimension_numbers = #tpu.dot_dimension_numbers<[1], [0], [0], [1], [0, 0, 1, 1], [], []>} : vector<8x8xbf16>, vector<8x256xbf16>, vector<8x256xf32> -> vector<8x256xf32>
    %101 = arith.addf %92, %100 : vector<8x256xf32>
    %c16_i32_49 = arith.constant 16 : i32
    %102 = tpu.dynamic_rotate %88 by %c16_i32_49 dim 1 : vector<8x256xf32>, i32 -> vector<8x256xf32>
    %103 = vector.extract_strided_slice %0 {offsets = [1, 0], sizes = [1, 256], strides = [1, 1]} : vector<9x256xf32> to vector<1x256xf32>
    %104 = vector.broadcast %103 : vector<1x256xf32> to vector<8x256xf32>
    %105 = arith.mulf %102, %104 : vector<8x256xf32>
    %c1_50 = arith.constant 1 : index
    %c0_51 = arith.constant 0 : index
    %c0_52 = arith.constant 0 : index
    %106 = vector.load %arg7[%c1_50, %c0_51, %c0_52] : memref<9x8x8xbf16, #tpu.memory_space<vmem>>, vector<1x8x8xbf16>
    %107 = vector.shape_cast %106 : vector<1x8x8xbf16> to vector<8x8xbf16>
    %108 = arith.truncf %105 : vector<8x256xf32> to vector<8x256xbf16>
    %cst_53 = arith.constant dense<0.000000e+00> : vector<8x256xf32>
    %109 = tpu.matmul %107, %108, %cst_53 {dimension_numbers = #tpu.dot_dimension_numbers<[1], [0], [0], [1], [0, 0, 1, 1], [], []>} : vector<8x8xbf16>, vector<8x256xbf16>, vector<8x256xf32> -> vector<8x256xf32>
    %110 = arith.addf %101, %109 : vector<8x256xf32>
    %c15_i32_54 = arith.constant 15 : i32
    %111 = tpu.dynamic_rotate %88 by %c15_i32_54 dim 1 : vector<8x256xf32>, i32 -> vector<8x256xf32>
    %112 = vector.extract_strided_slice %0 {offsets = [2, 0], sizes = [1, 256], strides = [1, 1]} : vector<9x256xf32> to vector<1x256xf32>
    %113 = vector.broadcast %112 : vector<1x256xf32> to vector<8x256xf32>
    %114 = arith.mulf %111, %113 : vector<8x256xf32>
    %c2_55 = arith.constant 2 : index
    %c0_56 = arith.constant 0 : index
    %c0_57 = arith.constant 0 : index
    %115 = vector.load %arg7[%c2_55, %c0_56, %c0_57] : memref<9x8x8xbf16, #tpu.memory_space<vmem>>, vector<1x8x8xbf16>
    %116 = vector.shape_cast %115 : vector<1x8x8xbf16> to vector<8x8xbf16>
    %117 = arith.truncf %114 : vector<8x256xf32> to vector<8x256xbf16>
    %cst_58 = arith.constant dense<0.000000e+00> : vector<8x256xf32>
    %118 = tpu.matmul %116, %117, %cst_58 {dimension_numbers = #tpu.dot_dimension_numbers<[1], [0], [0], [1], [0, 0, 1, 1], [], []>} : vector<8x8xbf16>, vector<8x256xbf16>, vector<8x256xf32> -> vector<8x256xf32>
    %119 = arith.addf %110, %118 : vector<8x256xf32>
    %c1_i32_59 = arith.constant 1 : i32
    %120 = tpu.dynamic_rotate %88 by %c1_i32_59 dim 1 : vector<8x256xf32>, i32 -> vector<8x256xf32>
    %121 = vector.extract_strided_slice %0 {offsets = [3, 0], sizes = [1, 256], strides = [1, 1]} : vector<9x256xf32> to vector<1x256xf32>
    %122 = vector.broadcast %121 : vector<1x256xf32> to vector<8x256xf32>
    %123 = arith.mulf %120, %122 : vector<8x256xf32>
    %c3_60 = arith.constant 3 : index
    %c0_61 = arith.constant 0 : index
    %c0_62 = arith.constant 0 : index
    %124 = vector.load %arg7[%c3_60, %c0_61, %c0_62] : memref<9x8x8xbf16, #tpu.memory_space<vmem>>, vector<1x8x8xbf16>
    %125 = vector.shape_cast %124 : vector<1x8x8xbf16> to vector<8x8xbf16>
    %126 = arith.truncf %123 : vector<8x256xf32> to vector<8x256xbf16>
    %cst_63 = arith.constant dense<0.000000e+00> : vector<8x256xf32>
    %127 = tpu.matmul %125, %126, %cst_63 {dimension_numbers = #tpu.dot_dimension_numbers<[1], [0], [0], [1], [0, 0, 1, 1], [], []>} : vector<8x8xbf16>, vector<8x256xbf16>, vector<8x256xf32> -> vector<8x256xf32>
    %128 = arith.addf %119, %127 : vector<8x256xf32>
    %c255_i32_64 = arith.constant 255 : i32
    %129 = tpu.dynamic_rotate %88 by %c255_i32_64 dim 1 : vector<8x256xf32>, i32 -> vector<8x256xf32>
    %130 = vector.extract_strided_slice %0 {offsets = [5, 0], sizes = [1, 256], strides = [1, 1]} : vector<9x256xf32> to vector<1x256xf32>
    %131 = vector.broadcast %130 : vector<1x256xf32> to vector<8x256xf32>
    %132 = arith.mulf %129, %131 : vector<8x256xf32>
    %c5_65 = arith.constant 5 : index
    %c0_66 = arith.constant 0 : index
    %c0_67 = arith.constant 0 : index
    %133 = vector.load %arg7[%c5_65, %c0_66, %c0_67] : memref<9x8x8xbf16, #tpu.memory_space<vmem>>, vector<1x8x8xbf16>
    %134 = vector.shape_cast %133 : vector<1x8x8xbf16> to vector<8x8xbf16>
    %135 = arith.truncf %132 : vector<8x256xf32> to vector<8x256xbf16>
    %cst_68 = arith.constant dense<0.000000e+00> : vector<8x256xf32>
    %136 = tpu.matmul %134, %135, %cst_68 {dimension_numbers = #tpu.dot_dimension_numbers<[1], [0], [0], [1], [0, 0, 1, 1], [], []>} : vector<8x8xbf16>, vector<8x256xbf16>, vector<8x256xf32> -> vector<8x256xf32>
    %137 = arith.addf %128, %136 : vector<8x256xf32>
    %c241_i32_69 = arith.constant 241 : i32
    %138 = tpu.dynamic_rotate %88 by %c241_i32_69 dim 1 : vector<8x256xf32>, i32 -> vector<8x256xf32>
    %139 = vector.extract_strided_slice %0 {offsets = [6, 0], sizes = [1, 256], strides = [1, 1]} : vector<9x256xf32> to vector<1x256xf32>
    %140 = vector.broadcast %139 : vector<1x256xf32> to vector<8x256xf32>
    %141 = arith.mulf %138, %140 : vector<8x256xf32>
    %c6_70 = arith.constant 6 : index
    %c0_71 = arith.constant 0 : index
    %c0_72 = arith.constant 0 : index
    %142 = vector.load %arg7[%c6_70, %c0_71, %c0_72] : memref<9x8x8xbf16, #tpu.memory_space<vmem>>, vector<1x8x8xbf16>
    %143 = vector.shape_cast %142 : vector<1x8x8xbf16> to vector<8x8xbf16>
    %144 = arith.truncf %141 : vector<8x256xf32> to vector<8x256xbf16>
    %cst_73 = arith.constant dense<0.000000e+00> : vector<8x256xf32>
    %145 = tpu.matmul %143, %144, %cst_73 {dimension_numbers = #tpu.dot_dimension_numbers<[1], [0], [0], [1], [0, 0, 1, 1], [], []>} : vector<8x8xbf16>, vector<8x256xbf16>, vector<8x256xf32> -> vector<8x256xf32>
    %146 = arith.addf %137, %145 : vector<8x256xf32>
    %c240_i32_74 = arith.constant 240 : i32
    %147 = tpu.dynamic_rotate %88 by %c240_i32_74 dim 1 : vector<8x256xf32>, i32 -> vector<8x256xf32>
    %148 = vector.extract_strided_slice %0 {offsets = [7, 0], sizes = [1, 256], strides = [1, 1]} : vector<9x256xf32> to vector<1x256xf32>
    %149 = vector.broadcast %148 : vector<1x256xf32> to vector<8x256xf32>
    %150 = arith.mulf %147, %149 : vector<8x256xf32>
    %c7_75 = arith.constant 7 : index
    %c0_76 = arith.constant 0 : index
    %c0_77 = arith.constant 0 : index
    %151 = vector.load %arg7[%c7_75, %c0_76, %c0_77] : memref<9x8x8xbf16, #tpu.memory_space<vmem>>, vector<1x8x8xbf16>
    %152 = vector.shape_cast %151 : vector<1x8x8xbf16> to vector<8x8xbf16>
    %153 = arith.truncf %150 : vector<8x256xf32> to vector<8x256xbf16>
    %cst_78 = arith.constant dense<0.000000e+00> : vector<8x256xf32>
    %154 = tpu.matmul %152, %153, %cst_78 {dimension_numbers = #tpu.dot_dimension_numbers<[1], [0], [0], [1], [0, 0, 1, 1], [], []>} : vector<8x8xbf16>, vector<8x256xbf16>, vector<8x256xf32> -> vector<8x256xf32>
    %155 = arith.addf %146, %154 : vector<8x256xf32>
    %c239_i32_79 = arith.constant 239 : i32
    %156 = tpu.dynamic_rotate %88 by %c239_i32_79 dim 1 : vector<8x256xf32>, i32 -> vector<8x256xf32>
    %157 = vector.extract_strided_slice %0 {offsets = [8, 0], sizes = [1, 256], strides = [1, 1]} : vector<9x256xf32> to vector<1x256xf32>
    %158 = vector.broadcast %157 : vector<1x256xf32> to vector<8x256xf32>
    %159 = arith.mulf %156, %158 : vector<8x256xf32>
    %c8_80 = arith.constant 8 : index
    %c0_81 = arith.constant 0 : index
    %c0_82 = arith.constant 0 : index
    %160 = vector.load %arg7[%c8_80, %c0_81, %c0_82] : memref<9x8x8xbf16, #tpu.memory_space<vmem>>, vector<1x8x8xbf16>
    %161 = vector.shape_cast %160 : vector<1x8x8xbf16> to vector<8x8xbf16>
    %162 = arith.truncf %159 : vector<8x256xf32> to vector<8x256xbf16>
    %cst_83 = arith.constant dense<0.000000e+00> : vector<8x256xf32>
    %163 = tpu.matmul %161, %162, %cst_83 {dimension_numbers = #tpu.dot_dimension_numbers<[1], [0], [0], [1], [0, 0, 1, 1], [], []>} : vector<8x8xbf16>, vector<8x256xbf16>, vector<8x256xf32> -> vector<8x256xf32>
    %164 = arith.addf %155, %163 : vector<8x256xf32>
    %c0_84 = arith.constant 0 : index
    %c0_85 = arith.constant 0 : index
    %165 = vector.load %arg8[%c0_84, %c0_85] : memref<8x1xf32, #tpu.memory_space<vmem>>, vector<8x1xf32>
    %166 = vector.broadcast %165 : vector<8x1xf32> to vector<8x256xf32>
    %167 = arith.addf %164, %166 : vector<8x256xf32>
    %cst_86 = arith.constant 0.000000e+00 : f32
    %168 = vector.broadcast %cst_86 : f32 to vector<8x256xf32>
    %169 = arith.maximumf %167, %168 : vector<8x256xf32>
    %c0_87 = arith.constant 0 : index
    %c0_88 = arith.constant 0 : index
    %c0_89 = arith.constant 0 : index
    %170 = vector.load %arg9[%c0_87, %c0_88, %c0_89] : memref<1x8x256xf32, #tpu.memory_space<vmem>>, vector<1x8x256xf32>
    %171 = vector.shape_cast %170 : vector<1x8x256xf32> to vector<8x256xf32>
    %172 = vector.shape_cast %169 : vector<8x256xf32> to vector<1x8x256xf32>
    tpu.vector_store %arg9[%c0_87, %c0_88, %c0_89], %172 {strides = array<i32>} : memref<1x8x256xf32, #tpu.memory_space<vmem>>, vector<1x8x256xf32>,
    return
  }
  func.func @transform_0(%arg0: i32) -> (i32, i32, i32) {
    %c0_i32 = arith.constant 0 : i32
    %c0_i32_0 = arith.constant 0 : i32
    %c0_i32_1 = arith.constant 0 : i32
    return %arg0, %c0_i32, %c0_i32_0 : i32, i32, i32
  }
  func.func @transform_1(%arg0: i32) -> (i32, i32, i32) {
    %c0_i32 = arith.constant 0 : i32
    %c0_i32_0 = arith.constant 0 : i32
    %c0_i32_1 = arith.constant 0 : i32
    return %arg0, %c0_i32, %c0_i32_0 : i32, i32, i32
  }
  func.func @transform_2(%arg0: i32) -> (i32, i32) {
    %c0_i32 = arith.constant 0 : i32
    %c0_i32_0 = arith.constant 0 : i32
    %c0_i32_1 = arith.constant 0 : i32
    return %c0_i32, %c0_i32_0 : i32, i32
  }
  func.func @transform_3(%arg0: i32) -> (i32, i32) {
    %c0_i32 = arith.constant 0 : i32
    %c0_i32_0 = arith.constant 0 : i32
    %c0_i32_1 = arith.constant 0 : i32
    return %c0_i32, %c0_i32_0 : i32, i32
  }
  func.func @transform_4(%arg0: i32) -> (i32, i32, i32) {
    %c0_i32 = arith.constant 0 : i32
    %c0_i32_0 = arith.constant 0 : i32
    %c0_i32_1 = arith.constant 0 : i32
    %c0_i32_2 = arith.constant 0 : i32
    return %c0_i32, %c0_i32_0, %c0_i32_1 : i32, i32, i32
  }
  func.func @transform_5(%arg0: i32) -> (i32, i32) {
    %c0_i32 = arith.constant 0 : i32
    %c0_i32_0 = arith.constant 0 : i32
    %c0_i32_1 = arith.constant 0 : i32
    return %c0_i32, %c0_i32_0 : i32, i32
  }
  func.func @transform_6(%arg0: i32) -> (i32, i32, i32) {
    %c0_i32 = arith.constant 0 : i32
    %c0_i32_0 = arith.constant 0 : i32
    %c0_i32_1 = arith.constant 0 : i32
    %c0_i32_2 = arith.constant 0 : i32
    return %c0_i32, %c0_i32_0, %c0_i32_1 : i32, i32, i32
  }
  func.func @transform_7(%arg0: i32) -> (i32, i32) {
    %c0_i32 = arith.constant 0 : i32
    %c0_i32_0 = arith.constant 0 : i32
    %c0_i32_1 = arith.constant 0 : i32
    return %c0_i32, %c0_i32_0 : i32, i32
  }
  func.func @transform_8(%arg0: i32) -> (i32, i32, i32) {
    %c0_i32 = arith.constant 0 : i32
    %c0_i32_0 = arith.constant 0 : i32
    %c0_i32_1 = arith.constant 0 : i32
    return %arg0, %c0_i32, %c0_i32_0 : i32, i32, i32
  }
}

</mosaic_0001>

<bundles_post_ra>
// kernel: forward.1
= control target key start
LH: loop header
LB: loop body
LE: loop exit
PB: predicated region body
PF: predicated region fallthrough
CT: control target
= control target key end

     0   :  { %s1897_s27 = smov 0   ;;  %s2313_s0 = inlined_call_operand.vmem [shape: f32[2,4,256], index: 0, kind: input, shape index: {}]   ;;  %s2314_s1 = inlined_call_operand.vmem [shape: bf16[2,4,49], index: 1, kind: input, shape index: {}]   ;;  %s2315_s2 = inlined_call_operand.vmem [shape: bf16[49,256], index: 2, kind: input, shape index: {}]   ;;  %s2316_s3 = inlined_call_operand.vmem [shape: f32[9,256], index: 3, kind: input, shape index: {}]   ;;  %s2317_s4 = inlined_call_operand.vmem [shape: bf16[9,8,8], index: 4, kind: input, shape index: {}]   ;;  %s2318_s5 = inlined_call_operand.vmem [shape: f32[8,1], index: 5, kind: input, shape index: {}]   ;;  %s2319_s6 = inlined_call_operand.vmem [shape: bf16[9,8,8], index: 6, kind: input, shape index: {}]   ;;  %s2320_s7 = inlined_call_operand.vmem [shape: f32[8,1], index: 7, kind: input, shape index: {}]   ;;  %s2321_s8 = inlined_call_operand.vmem [shape: f32[2,8,256], index: 8, kind: output, shape index: {}]  }
   0x1 LB: > { %s1728_s28 = sadd.s32 4294967295, %s1841_s27   ;;  %p1732_p0 = scmp.ge.s32.totalorder %s1841_s27, 1  ;;  %s1841_s27 = sphi %s1897_s27, %s18_s27  }
   0x2   : > { %p271_p1 = scmp.lt.s32.totalorder %s1841_s27, 3 }
   0x4   : > { %p272_p2 = pnand %p1732_p0, %p271_p1 }
   0x5   : > { %v1823_v0 = vld [vmem:[%s2315_s2 + $0x4] ss:$8 sps:$4 sm:$0xff] (!%p272_p2)   ;;  %v1825_v1 = vld [vmem:[%s2315_s2] ss:$8 sps:$4 sm:$0xff] (!%p272_p2)   ;;  %v1843_v2 = vmov (!%p272_p2), 0   ;;  %p309_p3 = scmp.lt.s32.totalorder (!%p272_p2), %s1728_s28, 1  ;;  %v446_v25 = vlaneseq (!%p272_p2) }
   0x6   : > { %275 = sbr.rel (%p272_p2) target bundleno = 1004 (0x3ec), region = 52  ;;  %416 = vmatprep.mubr.bf16.mxu0 (!%p272_p2), %v1843_v2  ;;  %506 = vmatprep.mubr.bf16.mxu1 (!%p272_p2), %v1843_v2  ;;  %v1826_v3 = vld [vmem:[%s2315_s2 + $0x14] ss:$8 sps:$4 sm:$0xff] (!%p272_p2)   ;;  %vm375_vm0 = vcmask (!%p272_p2), 1040384   ;;  %v1828_v4 = vld [vmem:[%s2315_s2 + $0x10] ss:$8 sps:$4 sm:$0xff] (!%p272_p2)  }
   0x7   : > { %384 = vmatprep.subr.bf16.mxu0 (!%p272_p2), %v1823_v0  ;;  %1822 = vset.pattern.permute.xlu0 (!%p272_p2), %v1843_v2  ;;  %v1829_v5 = vld [vmem:[%s2315_s2 + $0x24] ss:$8 sps:$4 sm:$0xff] (!%p272_p2)   ;;  %v335_v6 = vld [vmem:[%s2315_s2 + $0x30] sm:$0x11] (!%p272_p2)  ;;  %v377_v8 = vsel (!%p272_p2), %vm375_vm0, 65535, %v1843_v2  ;;  %vm371_vm1 = vcmask (!%p272_p2), 400384  }
   0x8   : > { %385 = vmatpush1.bf16.msra.mxu0 (!%p272_p2), %v1825_v1  ;;  %v1745_v7 = vcombine.high (!%p272_p2), %v335_v6, %v335_v6  ;;  %v1831_v9 = vld [vmem:[%s2315_s2 + $0x20] ss:$8 sps:$4 sm:$0xff] (!%p272_p2)   ;;  %v1744_v10 = vcombine.low (!%p272_p2), %v335_v6, %v335_v6  ;;  %vm435_vm2 = vcmask (!%p272_p2), 1043456   ;;  %s1844_s9 = smov (!%p272_p2), 16   ;;  %s1845_s10 = smov (!%p272_p2), 17   ;;  %v1982_v26 = vshrl.u32 (!%p272_p2), %v446_v25, 7 }
   0x9   : > { %386 = vmatprep.subr.bf16.mxu0 (!%p272_p2), %v1826_v3  ;;  %s1846_s11 = smov (!%p272_p2), 15   ;;  %s1847_s12 = smov (!%p272_p2), 1   ;;  %v1076_v24 = vld [vmem:[%s2318_s5] sm:$0xff] (!%p272_p2)  ;;  %v1984_v27 = vand.u32 (!%p272_p2), 127, %v446_v25  ;;  %v1995_v30 = vld [vmem:[%s2316_s3 + $0x8] sm:$0xff] (!%p272_p2)  ;;  %vm464_vm6 = vcmask (!%p272_p2), 64512  }
   0xa   : > { %v382_v11 = vand.u32 (!%p272_p2), %v1745_v7, %v377_v8  ;;  %v379_v12 = vand.u32 (!%p272_p2), %v1744_v10, %v377_v8  ;;  %s1848_s13 = smov (!%p272_p2), 127   ;;  %s1849_s14 = smov (!%p272_p2), 113   ;;  %v453_v28 = vsub.s32 (!%p272_p2), 0, %v1982_v26  ;;  %v1990_v29 = vld [vmem:[%s2316_s3] sm:$0xff] (!%p272_p2)  ;;  %v574_v33 = vsub.s32 (!%p272_p2), 1, %v1982_v26 }
   0xb   : > { %s1850_s15 = smov (!%p272_p2), 112   ;;  %s1851_s16 = smov (!%p272_p2), 111   ;;  %vm448_vm3 = vcmp.lt.s32.totalorder (!%p272_p2), %v1984_v27, 17  ;;  %v647_v35 = vsub.s32 (!%p272_p2), 2, %v1982_v26  ;;  %vm569_vm4 = vcmp.lt.s32.totalorder (!%p272_p2), %v1984_v27, 16  ;;  %vm642_vm5 = vcmp.lt.s32.totalorder (!%p272_p2), %v1984_v27, 15 }
   0xc   : > { %387 = vmatpush1.bf16.msra.mxu0 (!%p272_p2), %v1828_v4  ;;  %v2000_v34 = vrot.slane (!%p272_p2), %v1990_v29, %v453_v28  ;;  %v2004_v36 = vrot.slane (!%p272_p2), %v1995_v30, %v453_v28  ;;  %v2008_v39 = vrot.slane (!%p272_p2), %v1995_v30, %v574_v33  ;;  %v2024_v46 = vrot.slane (!%p272_p2), %v1990_v29, %v574_v33  ;;  %v461_v63 = vld [vmem:[%s2317_s4] sm:$0xf] (!%p272_p2)  ;;  %v1747_v28 = vld [vmem:[%s2317_s4 + $0x10] sm:$0xf] (!%p272_p2) }
   0xd   : > { %s2323_s28 = smov (!%p309_p3, %s1728_s28), 1  ;;  %388 = vmatprep.subr.bf16.mxu0 %v1829_v5  ;;  %v2017_v43 = vrot.slane %v1990_v29, %v647_v35  ;;  %v2020_v44 = vrot.slane %v1995_v30, %v647_v35  ;;  %v720_v52 = vsub.s32 3, %v1982_v26  ;;  %v793_v57 = vsub.s32 5, %v1982_v26 }
   0xe   : > { %s1735_s21 = sshll.u32 %s2323_s28, 1  ;;  %s1803_s25 = sshll.u32 %s2323_s28, 3  ;;  %vm715_vm7 = vcmp.lt.s32.totalorder %v1984_v27, 1  ;;  %vm788_vm8 = vcmp.lt.s32.totalorder %v1984_v27, 127  ;;  %vm861_vm9 = vcmp.lt.s32.totalorder %v1984_v27, 113  ;;  %vm934_vm10 = vcmp.lt.s32.totalorder %v1984_v27, 112 }
   0xf   : > { %s317_s24 = scalar_lea.vmem %s2314_s1, %s1735_s21  ;;  %s313_s30 = scalar_lea.vmem %s2313_s0, %s1803_s25  ;;  %v2051_v5 = vrot.slane %v1995_v30, %v720_v52  ;;  %v2056_v7 = vrot.slane %v1990_v29, %v793_v57  ;;  %vm1007_vm11 = vcmp.lt.s32.totalorder %v1984_v27, 111  ;;  %v1795_v27 = vld [vmem:[%s2319_s6 + $0x1c] sm:$0xf] }
  0x10   : > { %389 = vmatpush1.bf16.msra.mxu0 %v1831_v9  ;;  %v328_v13 = vld [vmem:[%s317_s24] sm:$0x3]  ;;  %s1804_s21 = sshll.u32 %s2323_s28, 4 }
  0x11   : > { %390 = vmatprep.subr.bf16.mxu0 %v382_v11  ;;  %v425_v15 = vld [vmem:[%s313_s30] sm:$0xff]  ;;  %v2063_v11 = vrot.slane %v1995_v30, %v793_v57 }
  0x12   : > { %v427_v19 = vcombine.high %v425_v15, %v425_v15 }
  0x14   : > { %391 = vmatpush1.bf16.msra.mxu0 %v379_v12 }
  0x17   : > { %1746 = vmatmul.mubr.msk.bf16.vlgmr.msra.gmra.mrb[0].mxu0 %vm371_vm1, %v328_v13  ;;  %v1755_v13 = vld [vmem:[%s2317_s4 + $0x8] sm:$0xf] }
  0x18   : > { %700 = vmatprep.mubr.bf16.mxu0 %v1843_v2 }
  0xea   : > { %v418_v14 = vpop.f32.mrb[0].mxu0 }
  0xeb   : > { %v431_v16 = vrot.slane %v418_v14, 4  ;;  %v420_v17 = vpop.f32.mrb[1].mxu0  ;;  %v2071_v14 = vrot.slane %v1990_v29, %v720_v52 }
  0xec   : > { %v422_v18 = vpop.f32.mrb[2].mxu0  ;;  %v432_v21 = vrot.slane %v420_v17, 4 }
  0xed   : > { %v1942_v20 = vsel %vm435_vm2, %v425_v15, %v431_v16  ;;  %v423_v22 = vpop.f32.mrb[3].mxu0 }
  0xee   : > { %565 = vrot.lane.b32.xlu1 %v1942_v20, %s1844_s9  ;;  %442 = vrot.lane.b32.xlu0 %v1942_v20, %s1845_s10  ;;  %v1949_v23 = vsel %vm435_vm2, %v427_v19, %v432_v21  ;;  %v440_v53 = vpack.c.bf16 %v1942_v20, %v1942_v20  ;;  %v866_v19 = vsub.s32 6, %v1982_v26 }
  0xef   : > { %v441_v56 = vpack.c.bf16 %v1949_v23, %v1949_v23 }
  0xf0   : > { %v519_v6 = vsel %vm435_vm2, %v440_v53, 0  ;;  %v2093_v35 = vrot.slane %v1995_v30, %v866_v19 }
  0xf2   : > { %567 = vrot.lane.b32.xlu1 %v1949_v23, %s1844_s9  ;;  %444 = vrot.lane.b32.xlu0 %v1949_v23, %s1845_s10 }
  0xf6   : > { %640 = vrot.lane.b32.xlu1 %v1949_v23, %s1846_s11  ;;  %638 = vrot.lane.b32.xlu0 %v1942_v20, %s1846_s11 }
  0xfa   : > { %713 = vrot.lane.b32.xlu1 %v1949_v23, %s1847_s12  ;;  %711 = vrot.lane.b32.xlu0 %v1942_v20, %s1847_s12 }
  0xfe   : > { %786 = vrot.lane.b32.xlu1 %v1949_v23, %s1848_s13  ;;  %784 = vrot.lane.b32.xlu0 %v1942_v20, %s1848_s13 }
 0x102   : > { %859 = vrot.lane.b32.xlu1 %v1949_v23, %s1849_s14  ;;  %857 = vrot.lane.b32.xlu0 %v1942_v20, %s1849_s14 }
 0x106   : > { %932 = vrot.lane.b32.xlu1 %v1949_v23, %s1850_s15  ;;  %930 = vrot.lane.b32.xlu0 %v1942_v20, %s1850_s15 }
 0x10a   : > { %1005 = vrot.lane.b32.xlu1 %v1949_v23, %s1851_s16  ;;  %1003 = vrot.lane.b32.xlu0 %v1942_v20, %s1851_s16  ;;  %v939_v20 = vsub.s32 7, %v1982_v26 }
 0x10e   : > { %1079 = vperm.xlu0 %1822, %v1076_v24  }
 0x160   : > { %v566_v31 = vpop.permute.xlu1 %565  ;;  %v443_v32 = vpop.permute.xlu0 %442 }
 0x164   : > { %v568_v37 = vpop.permute.xlu1 %567  ;;  %v445_v38 = vpop.permute.xlu0 %444 }
 0x165   : > { %v449_v40 = vsel %vm448_vm3, %v443_v32, %v445_v38  ;;  %v450_v41 = vsel %vm448_vm3, %v445_v38, %v443_v32  ;;  %v570_v47 = vsel %vm569_vm4, %v566_v31, %v568_v37  ;;  %v571_v62 = vsel %vm569_vm4, %v568_v37, %v566_v31 }
 0x166   : > { %v459_v42 = vmul.f32 %v2000_v34, %v450_v41  ;;  %v460_v45 = vmul.f32 %v2004_v36, %v449_v40  ;;  %v581_v58 = vmul.f32 %v2008_v39, %v570_v47  ;;  %v580_v8 = vmul.f32 %v2024_v46, %v571_v62 }
 0x167   : > { %v2097_v37 = vrot.slane %v1990_v29, %v939_v20  ;;  %v2100_v38 = vrot.slane %v1995_v30, %v939_v20  ;;  %v1761_v30 = vld [vmem:[%s2317_s4 + $0x14] sm:$0xf] }
 0x168   : > { %v641_v48 = vpop.permute.xlu1 %640  ;;  %v639_v49 = vpop.permute.xlu0 %638  ;;  %v463_v50 = vpack.c.bf16 %v460_v45, %v460_v45  ;;  %v462_v51 = vpack.c.bf16 %v459_v42, %v459_v42  ;;  %v585_v9 = vpack.c.bf16 %v581_v58, %v581_v58  ;;  %v584_v21 = vpack.c.bf16 %v580_v8, %v580_v8 }
 0x169   : > { %v643_v54 = vsel %vm642_vm5, %v639_v49, %v641_v48  ;;  %v644_v55 = vsel %vm642_vm5, %v641_v48, %v639_v49 }
 0x16a   : > { %v653_v59 = vmul.f32 %v2017_v43, %v644_v55  ;;  %v654_v60 = vmul.f32 %v2020_v44, %v643_v54  ;;  %1748 = vmatprep.subr.msk.bf16.mxu1 %vm435_vm2, %v463_v50  ;;  %v469_v61 = vsel %vm435_vm2, %v462_v51, 0  ;;  %v590_v42 = vsel %vm435_vm2, %v584_v21, 0  ;;  %v1772_v21 = vld [vmem:[%s2317_s4 + $0x20] sm:$0xf] }
 0x16b   : > { %475 = vmatpush1.bf16.msra.mxu1 %v469_v61  ;;  %v2115_v50 = vrot.slane %v1990_v29, %v866_v19  ;;  %v1752_v29 = vld [vmem:[%s2317_s4 + $0x4] sm:$0xf]  ;;  %v1764_v19 = vld [vmem:[%s2317_s4 + $0x18] sm:$0xf] }
 0x16c   : > { %v657_v0 = vpack.c.bf16 %v653_v59, %v653_v59  ;;  %v658_v1 = vpack.c.bf16 %v654_v60, %v654_v60  ;;  %v714_v3 = vpop.permute.xlu1 %713  ;;  %v712_v4 = vpop.permute.xlu0 %711  ;;  %1750 = vmatprep.subr.msk.bf16.mxu1 %vm435_vm2, %v441_v56 }
 0x16d   : > { %v716_v12 = vsel %vm715_vm7, %v712_v4, %v714_v3  ;;  %v717_v25 = vsel %vm715_vm7, %v714_v3, %v712_v4  ;;  %v2140_v3 = vld [vmem:[%s2316_s3 + $0x18] ss:$0 sm:$0xff] }
 0x16e   : > { %1749 = vmatmul.mubr.msk.bf16.vlgmr.msra.gmra.mrb[0].mxu1 %vm464_vm6, %v461_v63  ;;  %1756 = vmatprep.subr.msk.bf16.mxu0 %vm435_vm2, %v658_v1  ;;  %v663_v10 = vsel %vm435_vm2, %v657_v0, 0  ;;  %v727_v22 = vmul.f32 %v2051_v5, %v716_v12  ;;  %v726_v40 = vmul.f32 %v2071_v14, %v717_v25 }
 0x16f   : > { %525 = vmatpush1.bf16.msra.mxu1 %v519_v6  ;;  %669 = vmatpush1.bf16.msra.mxu0 %v663_v10  ;;  %v1767_v6 = vld [vmem:[%s2317_s4 + $0x1c] sm:$0xf]  ;;  %v2154_v10 = vld [vmem:[%s2316_s3 + $0x10] ss:$0 sm:$0xff] }
 0x170   : > { %v787_v15 = vpop.permute.xlu1 %786  ;;  %v785_v16 = vpop.permute.xlu0 %784  ;;  %1753 = vmatprep.subr.msk.bf16.mxu1 %vm435_vm2, %v585_v9  ;;  %556 = vmatprep.mubr.bf16.mxu1 %v1843_v2  ;;  %v731_v41 = vpack.c.bf16 %v727_v22, %v727_v22  ;;  %v730_v53 = vpack.c.bf16 %v726_v40, %v726_v40 }
 0x171   : > { %v789_v17 = vsel %vm788_vm8, %v785_v16, %v787_v15  ;;  %v790_v18 = vsel %vm788_vm8, %v787_v15, %v785_v16 }
 0x172   : > { %v799_v23 = vmul.f32 %v2056_v7, %v789_v17  ;;  %v800_v24 = vmul.f32 %v2063_v11, %v790_v18  ;;  %1757 = vmatmul.mubr.msk.bf16.vlgmr.msra.gmra.mrb[4].mxu0 %vm464_vm6, %v1755_v13  ;;  %v736_v0 = vsel %vm435_vm2, %v730_v53, 0  ;;  %v1758_v13 = vld [vmem:[%s2317_s4 + $0xc] sm:$0xf] }
 0x173   : > { %846 = vmatprep.mubr.bf16.mxu0 %v1843_v2 }
 0x174   : > { %v803_v31 = vpack.c.bf16 %v799_v23, %v799_v23  ;;  %v804_v26 = vpack.c.bf16 %v800_v24, %v800_v24  ;;  %v860_v32 = vpop.permute.xlu1 %859  ;;  %v858_v33 = vpop.permute.xlu0 %857 }
 0x175   : > { %v863_v47 = vsel %vm861_vm9, %v860_v32, %v858_v33  ;;  %v862_v57 = vsel %vm861_vm9, %v858_v33, %v860_v32 }
 0x176   : > { %1751 = vmatmul.mubr.msk.bf16.vlgmr.msra.gmra.mrb[4].mxu1 %vm464_vm6, %v1747_v28  ;;  %1762 = vmatprep.subr.msk.bf16.mxu0 %vm435_vm2, %v804_v26  ;;  %v809_v45 = vsel %vm435_vm2, %v803_v31, 0  ;;  %v873_v54 = vmul.f32 %v2093_v35, %v863_v47  ;;  %v872_v62 = vmul.f32 %v2115_v50, %v862_v57 }
 0x177   : > { %596 = vmatpush1.bf16.msra.mxu1 %v590_v42  ;;  %815 = vmatpush1.bf16.msra.mxu0 %v809_v45 }
 0x178   : > { %1759 = vmatprep.subr.msk.bf16.mxu1 %vm435_vm2, %v731_v41  ;;  %v933_v48 = vpop.permute.xlu1 %932  ;;  %v931_v49 = vpop.permute.xlu0 %930  ;;  %627 = vmatprep.mubr.bf16.mxu1 %v1843_v2  ;;  %v877_v63 = vpack.c.bf16 %v873_v54, %v873_v54  ;;  %v876_v8 = vpack.c.bf16 %v872_v62, %v872_v62 }
 0x179   : > { %v935_v51 = vsel %vm934_vm10, %v931_v49, %v933_v48  ;;  %v936_v52 = vsel %vm934_vm10, %v933_v48, %v931_v49 }
 0x17a   : > { %v945_v55 = vmul.f32 %v2097_v37, %v935_v51  ;;  %v946_v56 = vmul.f32 %v2100_v38, %v936_v52  ;;  %1763 = vmatmul.mubr.msk.bf16.vlgmr.msra.gmra.mrb[8].mxu0 %vm464_vm6, %v1761_v30  ;;  %v882_v17 = vsel %vm435_vm2, %v876_v8, 0 }
 0x17b   : > { %992 = vmatprep.mubr.bf16.mxu0 %v1843_v2 }
 0x17c   : > { %v949_v58 = vpack.c.bf16 %v945_v55, %v945_v55  ;;  %v950_v59 = vpack.c.bf16 %v946_v56, %v946_v56  ;;  %v1006_v60 = vpop.permute.xlu1 %1005  ;;  %v1004_v61 = vpop.permute.xlu0 %1003 }
 0x17d   : > { %v1009_v4 = vsel %vm1007_vm11, %v1006_v60, %v1004_v61  ;;  %v1008_v12 = vsel %vm1007_vm11, %v1004_v61, %v1006_v60 }
 0x17e   : > { %1754 = vmatmul.mubr.msk.bf16.vlgmr.msra.gmra.mrb[8].mxu1 %vm464_vm6, %v1752_v29  ;;  %1768 = vmatprep.subr.msk.bf16.mxu0 %vm435_vm2, %v950_v59  ;;  %v955_v1 = vsel %vm435_vm2, %v949_v58, 0  ;;  %v1019_v9 = vmul.f32 %v2140_v3, %v1009_v4  ;;  %v1018_v15 = vmul.f32 %v2154_v10, %v1008_v12 }
 0x17f   : > { %742 = vmatpush1.bf16.msra.mxu1 %v736_v0  ;;  %961 = vmatpush1.bf16.msra.mxu0 %v955_v1 }
 0x180   : > { %1765 = vmatprep.subr.msk.bf16.mxu1 %vm435_vm2, %v877_v63  ;;  %773 = vmatprep.mubr.bf16.mxu1 %v1843_v2  ;;  %v1023_v16 = vpack.c.bf16 %v1019_v9, %v1019_v9  ;;  %v1022_v18 = vpack.c.bf16 %v1018_v15, %v1018_v15 }
 0x182   : > { %1769 = vmatmul.mubr.msk.bf16.vlgmr.msra.gmra.mrb[12].mxu0 %vm464_vm6, %v1767_v6  ;;  %v1028_v20 = vsel %vm435_vm2, %v1022_v18, 0 }
 0x183   : > { %1142 = vmatprep.mubr.bf16.mxu0 %v1843_v2 }
 0x186   : > { %1760 = vmatmul.mubr.msk.bf16.vlgmr.msra.gmra.mrb[12].mxu1 %vm464_vm6, %v1758_v13 }
 0x187   : > { %888 = vmatpush1.bf16.msra.mxu1 %v882_v17  ;;  %919 = vmatprep.mubr.bf16.mxu1 %v1843_v2 }
 0x188   : > { %1773 = vmatprep.subr.msk.bf16.mxu1 %vm435_vm2, %v1023_v16 }
 0x18e   : > { %1766 = vmatmul.mubr.msk.bf16.vlgmr.msra.gmra.mrb[16].mxu1 %vm464_vm6, %v1764_v19 }
 0x18f   : > { %1034 = vmatpush1.bf16.msra.mxu1 %v1028_v20  ;;  %1065 = vmatprep.mubr.bf16.mxu1 %v1843_v2 }
 0x196   : > { %1774 = vmatmul.mubr.msk.bf16.vlgmr.msra.gmra.mrb[20].mxu1 %vm464_vm6, %v1772_v21 }
 0x197   : > { %1192 = vmatprep.mubr.bf16.mxu1 %v1843_v2 }
 0x241   : > { %v508_v22 = vpop.f32.mrb[0].mxu1 }
 0x242   : > { %v510_v23 = vpop.f32.mrb[1].mxu1 }
 0x243   : > { %v512_v24 = vpop.f32.mrb[2].mxu1 }
 0x244   : > { %v513_v25 = vpop.f32.mrb[3].mxu1 }
 0x245   : > { %v702_v28 = vpop.f32.mrb[4].mxu0 }
 0x246   : > { %v704_v31 = vpop.f32.mrb[5].mxu0 }
 0x247   : > { %v706_v26 = vpop.f32.mrb[6].mxu0 }
 0x248   : > { %v707_v32 = vpop.f32.mrb[7].mxu0 }
 0x249   : > { %v558_v33 = vpop.f32.mrb[4].mxu1 }
 0x24a   : > { %v559_v40 = vadd.f32 %v558_v33, %v508_v22  ;;  %v560_v41 = vpop.f32.mrb[5].mxu1 }
 0x24b   : > { %v561_v42 = vadd.f32 %v560_v41, %v510_v23  ;;  %v562_v45 = vpop.f32.mrb[6].mxu1  ;;  %v1080_v23 = vpop.permute.xlu0 %1079 }
 0x24c   : > { %v563_v47 = vpop.f32.mrb[7].mxu1 }
 0x24d   : > { %v848_v30 = vpop.f32.mrb[8].mxu0 }
 0x24e   : > { %v850_v48 = vpop.f32.mrb[9].mxu0 }
 0x24f   : > { %v852_v49 = vpop.f32.mrb[10].mxu0 }
 0x250   : > { %v853_v51 = vpop.f32.mrb[11].mxu0 }
 0x251   : > { %v629_v52 = vpop.f32.mrb[8].mxu1 }
 0x252   : > { %v636_v53 = vadd.f32 %v629_v52, %v559_v40  ;;  %v631_v54 = vpop.f32.mrb[9].mxu1 }
 0x253   : > { %v637_v55 = vadd.f32 %v631_v54, %v561_v42  ;;  %v633_v56 = vpop.f32.mrb[10].mxu1 }
 0x254   : > { %v709_v57 = vadd.f32 %v702_v28, %v636_v53  ;;  %v634_v29 = vpop.f32.mrb[11].mxu1 }
 0x255   : > { %v710_v58 = vadd.f32 %v704_v31, %v637_v55  ;;  %v994_v59 = vpop.f32.mrb[12].mxu0 }
 0x256   : > { %v996_v60 = vpop.f32.mrb[13].mxu0 }
 0x257   : > { %v998_v61 = vpop.f32.mrb[14].mxu0 }
 0x258   : > { %v999_v62 = vpop.f32.mrb[15].mxu0 }
 0x259   : > { %v775_v63 = vpop.f32.mrb[12].mxu1 }
 0x25a   : > { %v782_v0 = vadd.f32 %v775_v63, %v709_v57  ;;  %v777_v1 = vpop.f32.mrb[13].mxu1 }
 0x25b   : > { %v783_v4 = vadd.f32 %v777_v1, %v710_v58  ;;  %v779_v6 = vpop.f32.mrb[14].mxu1 }
 0x25c   : > { %v855_v8 = vadd.f32 %v848_v30, %v782_v0  ;;  %v780_v9 = vpop.f32.mrb[15].mxu1  ;;  %v1775_v30 = vld [vmem:[%s2319_s6 + $0x10] sm:$0xf] }
 0x25d   : > { %v856_v12 = vadd.f32 %v850_v48, %v783_v4  ;;  %v1649_v48 = vld [vmem:[%s2320_s7] sm:$0xff] }
 0x261   : > { %v921_v13 = vpop.f32.mrb[16].mxu1 }
 0x262   : > { %v928_v15 = vadd.f32 %v921_v13, %v855_v8  ;;  %v923_v16 = vpop.f32.mrb[17].mxu1 }
 0x263   : > { %v929_v17 = vadd.f32 %v923_v16, %v856_v12  ;;  %v925_v18 = vpop.f32.mrb[18].mxu1 }
 0x264   : > { %v1001_v19 = vadd.f32 %v994_v59, %v928_v15  ;;  %v926_v20 = vpop.f32.mrb[19].mxu1 }
 0x265   : > { %v1002_v21 = vadd.f32 %v996_v60, %v929_v17 }
 0x269   : > { %v1067_v22 = vpop.f32.mrb[20].mxu1 }
 0x26a   : > { %v1074_v24 = vadd.f32 %v1067_v22, %v1001_v19  ;;  %v1069_v25 = vpop.f32.mrb[21].mxu1 }
 0x26b   : > { %v1075_v28 = vadd.f32 %v1069_v25, %v1002_v21  ;;  %v1071_v31 = vpop.f32.mrb[22].mxu1  ;;  %v1780_v21 = vld [vmem:[%s2319_s6 + $0x4] sm:$0xf] }
 0x26c   : > { %v1082_v26 = vadd.f32 %v1080_v23, %v1074_v24  ;;  %v1072_v32 = vpop.f32.mrb[23].mxu1 }
 0x26d   : > { %v1083_v33 = vadd.f32 %v1080_v23, %v1075_v28  ;;  %v1783_v28 = vld [vmem:[%s2319_s6 + $0x8] sm:$0xf] }
 0x26e   : > { %v1084_v40 = vmax.f32 %v1082_v26, 0.0 }
 0x26f   : > { %v1085_v41 = vmax.f32 %v1083_v33, 0.0 }
 0x270   : > { %1201 = vrot.lane.b32.xlu0 %v1084_v40, %s1844_s9  ;;  %1090 = vrot.lane.b32.xlu1 %v1084_v40, %s1845_s10  ;;  %v1088_v42 = vpack.c.bf16 %v1084_v40, %v1084_v40 }
 0x271   : > { %v1089_v45 = vpack.c.bf16 %v1085_v41, %v1085_v41 }
 0x272   : > { %v1155_v47 = vsel %vm435_vm2, %v1088_v42, 0 }
 0x273   : > { %1778 = vmatprep.subr.msk.bf16.mxu1 %vm435_vm2, %v1089_v45 }
 0x274   : > { %1265 = vrot.lane.b32.xlu0 %v1084_v40, %s1846_s11  ;;  %1092 = vrot.lane.b32.xlu1 %v1085_v41, %s1845_s10  ;;  %s322_s10 = scalar_lea.vmem %s2321_s8, %s1804_s21 }
 0x275   : > { %1161 = vmatpush1.bf16.msra.mxu1 %v1155_v47 }
 0x278   : > { %1329 = vrot.lane.b32.xlu0 %v1084_v40, %s1847_s12  ;;  %1203 = vrot.lane.b32.xlu1 %v1085_v41, %s1844_s9 }
 0x279   : > { %1779 = vmatmul.mubr.msk.bf16.vlgmr.msra.gmra.mrb[24].mxu1 %vm464_vm6, %v1775_v30 }
 0x27a   : > { %1318 = vmatprep.mubr.bf16.mxu1 %v1843_v2 }
 0x27c   : > { %1393 = vrot.lane.b32.xlu0 %v1084_v40, %s1848_s13  ;;  %1267 = vrot.lane.b32.xlu1 %v1085_v41, %s1846_s11 }
 0x280   : > { %1457 = vrot.lane.b32.xlu0 %v1084_v40, %s1849_s14  ;;  %1331 = vrot.lane.b32.xlu1 %v1085_v41, %s1847_s12 }
 0x284   : > { %1521 = vrot.lane.b32.xlu0 %v1084_v40, %s1850_s15  ;;  %1395 = vrot.lane.b32.xlu1 %v1085_v41, %s1848_s13 }
 0x288   : > { %1585 = vrot.lane.b32.xlu0 %v1084_v40, %s1851_s16  ;;  %1459 = vrot.lane.b32.xlu1 %v1085_v41, %s1849_s14 }
 0x28c   : > { %1652 = vperm.xlu0 %1822, %v1649_v48   ;;  %1523 = vrot.lane.b32.xlu1 %v1085_v41, %s1850_s15  ;;  %v1786_v48 = vld [vmem:[%s2319_s6 + $0xc] sm:$0xf] }
 0x290   : > { %1587 = vrot.lane.b32.xlu1 %v1085_v41, %s1851_s16 }
 0x2e2   : > { %v1202_v49 = vpop.permute.xlu0 %1201  ;;  %v1091_v51 = vpop.permute.xlu1 %1090 }
 0x2e6   : > { %v1266_v52 = vpop.permute.xlu0 %1265  ;;  %v1093_v53 = vpop.permute.xlu1 %1092 }
 0x2e7   : > { %v1094_v54 = vsel %vm448_vm3, %v1091_v51, %v1093_v53  ;;  %v1095_v55 = vsel %vm448_vm3, %v1093_v53, %v1091_v51  ;;  %v1789_v53 = vld [vmem:[%s2319_s6 + $0x14] sm:$0xf] }
 0x2e8   : > { %v1096_v56 = vmul.f32 %v1095_v55, %v2000_v34  ;;  %v1097_v57 = vmul.f32 %v1094_v54, %v2004_v36  ;;  %v1098_v36 = vld [vmem:[%s2319_s6] sm:$0xf] }
 0x2ea   : > { %v1099_v29 = vpack.c.bf16 %v1096_v56, %v1096_v56  ;;  %v1100_v58 = vpack.c.bf16 %v1097_v57, %v1097_v57  ;;  %v1330_v59 = vpop.permute.xlu0 %1329  ;;  %v1204_v60 = vpop.permute.xlu1 %1203 }
 0x2eb   : > { %v1205_v61 = vsel %vm569_vm4, %v1202_v49, %v1204_v60  ;;  %v1206_v62 = vsel %vm569_vm4, %v1204_v60, %v1202_v49 }
 0x2ec   : > { %v1207_v63 = vmul.f32 %v1206_v62, %v2024_v46  ;;  %v1208_v0 = vmul.f32 %v1205_v61, %v2008_v39  ;;  %1776 = vmatprep.subr.msk.bf16.mxu0 %vm435_vm2, %v1100_v58  ;;  %v1105_v34 = vsel %vm435_vm2, %v1099_v29, 0 }
 0x2ed   : > { %1111 = vmatpush1.bf16.msra.mxu0 %v1105_v34 }
 0x2ee   : > { %v1211_v1 = vpack.c.bf16 %v1207_v63, %v1207_v63  ;;  %v1212_v4 = vpack.c.bf16 %v1208_v0, %v1208_v0  ;;  %v1268_v6 = vpop.permute.xlu1 %1267  ;;  %v1394_v9 = vpop.permute.xlu0 %1393  ;;  %v1792_v63 = vld [vmem:[%s2319_s6 + $0x18] sm:$0xf] }
 0x2ef   : > { %v1269_v8 = vsel %vm642_vm5, %v1266_v52, %v1268_v6  ;;  %v1270_v46 = vsel %vm642_vm5, %v1268_v6, %v1266_v52 }
 0x2f0   : > { %v1271_v39 = vmul.f32 %v1270_v46, %v2017_v43  ;;  %v1272_v12 = vmul.f32 %v1269_v8, %v2020_v44  ;;  %1777 = vmatmul.mubr.msk.bf16.vlgmr.msra.gmra.mrb[16].mxu0 %vm464_vm6, %v1098_v36  ;;  %1781 = vmatprep.subr.msk.bf16.mxu0 %vm435_vm2, %v1212_v4  ;;  %v1217_v13 = vsel %vm435_vm2, %v1211_v1, 0 }
 0x2f1   : > { %1223 = vmatpush1.bf16.msra.mxu0 %v1217_v13  ;;  %1254 = vmatprep.mubr.bf16.mxu0 %v1843_v2 }
 0x2f2   : > { %v1275_v15 = vpack.c.bf16 %v1271_v39, %v1271_v39  ;;  %v1276_v16 = vpack.c.bf16 %v1272_v12, %v1272_v12  ;;  %v1332_v17 = vpop.permute.xlu1 %1331  ;;  %v1458_v22 = vpop.permute.xlu0 %1457 }
 0x2f3   : > { %v1333_v18 = vsel %vm715_vm7, %v1330_v59, %v1332_v17  ;;  %v1334_v43 = vsel %vm715_vm7, %v1332_v17, %v1330_v59 }
 0x2f4   : > { %v1335_v44 = vmul.f32 %v1334_v43, %v2071_v14  ;;  %v1336_v19 = vmul.f32 %v1333_v18, %v2051_v5  ;;  %1784 = vmatprep.subr.msk.bf16.mxu1 %vm435_vm2, %v1276_v16  ;;  %v1281_v20 = vsel %vm435_vm2, %v1275_v15, 0 }
 0x2f5   : > { %1287 = vmatpush1.bf16.msra.mxu1 %v1281_v20 }
 0x2f6   : > { %v1339_v23 = vpack.c.bf16 %v1335_v44, %v1335_v44  ;;  %v1340_v24 = vpack.c.bf16 %v1336_v19, %v1336_v19  ;;  %v1396_v25 = vpop.permute.xlu1 %1395  ;;  %v1522_v42 = vpop.permute.xlu0 %1521 }
 0x2f7   : > { %v1397_v5 = vsel %vm788_vm8, %v1394_v9, %v1396_v25  ;;  %v1398_v14 = vsel %vm788_vm8, %v1396_v25, %v1394_v9 }
 0x2f8   : > { %v1399_v31 = vmul.f32 %v1397_v5, %v2056_v7  ;;  %v1400_v26 = vmul.f32 %v1398_v14, %v2063_v11  ;;  %1782 = vmatmul.mubr.msk.bf16.vlgmr.msra.gmra.mrb[20].mxu0 %vm464_vm6, %v1780_v21  ;;  %1787 = vmatprep.subr.msk.bf16.mxu0 %vm435_vm2, %v1340_v24  ;;  %v1345_v32 = vsel %vm435_vm2, %v1339_v23, 0 }
 0x2f9   : > { %1351 = vmatpush1.bf16.msra.mxu0 %v1345_v32  ;;  %1785 = vmatmul.mubr.msk.bf16.vlgmr.msra.gmra.mrb[28].mxu1 %vm464_vm6, %v1783_v28 }
 0x2fa   : > { %v1403_v33 = vpack.c.bf16 %v1399_v31, %v1399_v31  ;;  %v1404_v40 = vpack.c.bf16 %v1400_v26, %v1400_v26  ;;  %v1460_v41 = vpop.permute.xlu1 %1459  ;;  %1382 = vmatprep.mubr.bf16.mxu0 %v1843_v2  ;;  %1446 = vmatprep.mubr.bf16.mxu1 %v1843_v2  ;;  %v1586_v57 = vpop.permute.xlu0 %1585 }
 0x2fb   : > { %v1461_v7 = vsel %vm861_vm9, %v1458_v22, %v1460_v41  ;;  %v1462_v11 = vsel %vm861_vm9, %v1460_v41, %v1458_v22 }
 0x2fc   : > { %v1463_v45 = vmul.f32 %v1461_v7, %v2115_v50  ;;  %v1464_v47 = vmul.f32 %v1462_v11, %v2093_v35  ;;  %1790 = vmatprep.subr.msk.bf16.mxu1 %vm435_vm2, %v1404_v40  ;;  %v1409_v30 = vsel %vm435_vm2, %v1403_v33, 0 }
 0x2fd   : > { %1415 = vmatpush1.bf16.msra.mxu1 %v1409_v30 }
 0x2fe   : > { %v1467_v49 = vpack.c.bf16 %v1463_v45, %v1463_v45  ;;  %v1468_v51 = vpack.c.bf16 %v1464_v47, %v1464_v47  ;;  %v1524_v52 = vpop.permute.xlu1 %1523 }
 0x2ff   : > { %v1525_v50 = vsel %vm934_vm10, %v1522_v42, %v1524_v52  ;;  %v1526_v35 = vsel %vm934_vm10, %v1524_v52, %v1522_v42 }
 0x300   : > { %v1527_v54 = vmul.f32 %v1525_v50, %v2097_v37  ;;  %v1528_v55 = vmul.f32 %v1526_v35, %v2100_v38  ;;  %1788 = vmatmul.mubr.msk.bf16.vlgmr.msra.gmra.mrb[24].mxu0 %vm464_vm6, %v1786_v48  ;;  %1793 = vmatprep.subr.msk.bf16.mxu0 %vm435_vm2, %v1468_v51  ;;  %v1473_v56 = vsel %vm435_vm2, %v1467_v49, 0 }
 0x301   : > { %1479 = vmatpush1.bf16.msra.mxu0 %v1473_v56  ;;  %1791 = vmatmul.mubr.msk.bf16.vlgmr.msra.gmra.mrb[32].mxu1 %vm464_vm6, %v1789_v53 }
 0x302   : > { %v1531_v29 = vpack.c.bf16 %v1527_v54, %v1527_v54  ;;  %v1532_v58 = vpack.c.bf16 %v1528_v55, %v1528_v55  ;;  %v1588_v59 = vpop.permute.xlu1 %1587  ;;  %1510 = vmatprep.mubr.bf16.mxu0 %v1843_v2  ;;  %1574 = vmatprep.mubr.bf16.mxu1 %v1843_v2 }
 0x303   : > { %v1589_v37 = vsel %vm1007_vm11, %v1586_v57, %v1588_v59  ;;  %v1590_v38 = vsel %vm1007_vm11, %v1588_v59, %v1586_v57 }
 0x304   : > { %v1591_v60 = vmul.f32 %v2154_v10, %v1589_v37  ;;  %v1592_v61 = vmul.f32 %v2140_v3, %v1590_v38  ;;  %1796 = vmatprep.subr.msk.bf16.mxu1 %vm435_vm2, %v1532_v58  ;;  %v1537_v62 = vsel %vm435_vm2, %v1531_v29, 0  ;;  %v1798_v10 = vld [vmem:[%s2319_s6 + $0x20] sm:$0xf] }
 0x305   : > { %1543 = vmatpush1.bf16.msra.mxu1 %v1537_v62 }
 0x306   : > { %v1595_v0 = vpack.c.bf16 %v1591_v60, %v1591_v60  ;;  %v1596_v34 = vpack.c.bf16 %v1592_v61, %v1592_v61 }
 0x308   : > { %1794 = vmatmul.mubr.msk.bf16.vlgmr.msra.gmra.mrb[28].mxu0 %vm464_vm6, %v1792_v63  ;;  %1799 = vmatprep.subr.msk.bf16.mxu0 %vm435_vm2, %v1596_v34  ;;  %v1601_v3 = vsel %vm435_vm2, %v1595_v0, 0 }
 0x309   : > { %1607 = vmatpush1.bf16.msra.mxu0 %v1601_v3  ;;  %1797 = vmatmul.mubr.msk.bf16.vlgmr.msra.gmra.mrb[36].mxu1 %vm464_vm6, %v1795_v27 }
 0x30a   : > { %1638 = vmatprep.mubr.bf16.mxu0 %v1843_v2 }
 0x30b   : > { %v1653_v57 = vpop.permute.xlu0 %1652 }
 0x310   : > { %1800 = vmatmul.mubr.msk.bf16.vlgmr.msra.gmra.mrb[32].mxu0 %vm464_vm6, %v1798_v10 }
 0x34c   : > { %v1194_v36 = vpop.f32.mrb[24].mxu1 }
 0x34d   : > { %v1196_v1 = vpop.f32.mrb[25].mxu1 }
 0x34e   : > { %v1198_v4 = vpop.f32.mrb[26].mxu1 }
 0x34f   : > { %v1199_v6 = vpop.f32.mrb[27].mxu1 }
 0x3c3   : > { %v1144_v8 = vpop.f32.mrb[16].mxu0 }
 0x3c4   : > { %v1146_v46 = vpop.f32.mrb[17].mxu0  ;;  %v1195_v9 = vadd.f32 %v1194_v36, %v1144_v8 }
 0x3c5   : > { %v1148_v39 = vpop.f32.mrb[18].mxu0  ;;  %v1197_v12 = vadd.f32 %v1196_v1, %v1146_v46 }
 0x3c6   : > { %v1149_v13 = vpop.f32.mrb[19].mxu0 }
 0x3cb   : > { %v1256_v15 = vpop.f32.mrb[20].mxu0 }
 0x3cc   : > { %v1263_v16 = vadd.f32 %v1256_v15, %v1195_v9  ;;  %v1258_v17 = vpop.f32.mrb[21].mxu0  ;;  %v1320_v2 = vpop.f32.mrb[28].mxu1 }
 0x3cd   : > { %v1264_v18 = vadd.f32 %v1258_v17, %v1197_v12  ;;  %v1322_v43 = vpop.f32.mrb[29].mxu1  ;;  %v1260_v44 = vpop.f32.mrb[22].mxu0 }
 0x3ce   : > { %v1327_v19 = vadd.f32 %v1320_v2, %v1263_v16  ;;  %v1261_v20 = vpop.f32.mrb[23].mxu0  ;;  %v1324_v21 = vpop.f32.mrb[30].mxu1 }
 0x3cf   : > { %v1328_v22 = vadd.f32 %v1322_v43, %v1264_v18  ;;  %v1325_v23 = vpop.f32.mrb[31].mxu1 }
 0x3d3   : > { %v1384_v24 = vpop.f32.mrb[24].mxu0 }
 0x3d4   : > { %v1391_v25 = vadd.f32 %v1384_v24, %v1327_v19  ;;  %v1386_v28 = vpop.f32.mrb[25].mxu0  ;;  %v1448_v5 = vpop.f32.mrb[32].mxu1 }
 0x3d5   : > { %v1392_v14 = vadd.f32 %v1386_v28, %v1328_v22  ;;  %v1450_v31 = vpop.f32.mrb[33].mxu1  ;;  %v1388_v26 = vpop.f32.mrb[26].mxu0 }
 0x3d6   : > { %v1455_v32 = vadd.f32 %v1448_v5, %v1391_v25  ;;  %v1389_v33 = vpop.f32.mrb[27].mxu0  ;;  %v1452_v40 = vpop.f32.mrb[34].mxu1 }
 0x3d7   : > { %v1456_v41 = vadd.f32 %v1450_v31, %v1392_v14  ;;  %v1453_v7 = vpop.f32.mrb[35].mxu1 }
 0x3db   : > { %v1512_v11 = vpop.f32.mrb[28].mxu0 }
 0x3dc   : > { %v1519_v42 = vadd.f32 %v1512_v11, %v1455_v32  ;;  %v1514_v45 = vpop.f32.mrb[29].mxu0  ;;  %v1576_v47 = vpop.f32.mrb[36].mxu1 }
 0x3dd   : > { %v1520_v30 = vadd.f32 %v1514_v45, %v1456_v41  ;;  %v1578_v48 = vpop.f32.mrb[37].mxu1  ;;  %v1516_v49 = vpop.f32.mrb[30].mxu0 }
 0x3de   : > { %v1583_v51 = vadd.f32 %v1576_v47, %v1519_v42  ;;  %v1517_v52 = vpop.f32.mrb[31].mxu0  ;;  %v1580_v53 = vpop.f32.mrb[38].mxu1 }
 0x3df   : > { %v1584_v50 = vadd.f32 %v1578_v48, %v1520_v30  ;;  %v1581_v35 = vpop.f32.mrb[39].mxu1 }
 0x3e3   : > { %v1640_v54 = vpop.f32.mrb[32].mxu0 }
 0x3e4   : > { %v1647_v55 = vadd.f32 %v1640_v54, %v1583_v51  ;;  %v1642_v56 = vpop.f32.mrb[33].mxu0 }
 0x3e5   : > { %v1648_v29 = vadd.f32 %v1642_v56, %v1584_v50  ;;  %v1644_v58 = vpop.f32.mrb[34].mxu0 }
 0x3e6   : > { %v1655_v59 = vadd.f32 %v1653_v57, %v1647_v55  ;;  %v1645_v37 = vpop.f32.mrb[35].mxu0 }
 0x3e7   : > { %v1656_v38 = vadd.f32 %v1653_v57, %v1648_v29 }
 0x3e8   : > { %v1657_v60 = vmax.f32 %v1655_v59, 0.0 }
 0x3e9   : > { %v1658_v61 = vmax.f32 %v1656_v38, 0.0 }
 0x3ea   : > { %1659 = vst [vmem:[%s322_s10] sm:$0xff] %v1657_v60 }
 0x3eb   : > { %1660 = vst [vmem:[%s322_s10 + $0x8] sm:$0xff] %v1658_v61 }
 0x3ec PF: > { %s18_s27 = sadd.s32 1, %s1841_s27  }
 0x3ed   : > { %p15_p4 = scmp.ge.s32.totalorder %s18_s27, 4  }
 0x3ef   :  { %17 = sbr.rel (!%p15_p4) target bundleno = 1 (0x1), region = 101 }

</bundles_post_ra>
